<compile_context>
chip_gen: v7x
topology: tpu7x:2x2x1
jax: 0.10.0
libtpu: 0.0.40
codegen_flags: <defaults>
</compile_context>

<pallas_src>
import functools

import jax
import jax.numpy as jnp
from jax.experimental import pallas as pl
from jax.experimental.pallas import tpu as pltpu


def _phi_kernel(inv_norm, eps_ref, chol_ref, nu_ref, x0_ref,
                phi_ref, fea_ref, sig_ref, k_ref):
    """phi samples + per-sample statistics, all resident in VMEM.

    eps:  (S, D)   standard-normal samples (torch.randn hoisted outside)
    chol: (D, D)   tril(Psi, -1) + I
    nu:   (1, D)
    x0:   (1, D)   x_0 flattened to a row
    outputs:
      phi: (S, D)
      fea: (S, D)   fea_vec = phi * (x0.phi / ||phi||^2)
      sig: (S, 1)   sigma_s (see TODO)
      k:   (S, 1)   (x0.phi)^2 / ||phi||^2   (soft-constraint factor)
    """
    eps = eps_ref[...]
    chol = chol_ref[...]

    # NOTE: HIGHEST precision is negligible at D=16; drop to DEFAULT if D>=128.
    lin = jnp.dot(eps, chol,
                  preferred_element_type=jnp.float32,
                  precision=jax.lax.Precision.HIGHEST)
    phi = jnp.exp((lin + nu_ref[...]) * inv_norm)            # (S, D)
    phi_ref[...] = phi

    x0phi = jnp.sum(phi * x0_ref[...], axis=1, keepdims=True)   # (S, 1)
    dot_diag = jnp.sum(phi * phi, axis=1, keepdims=True)        # (S, 1)
    inv_dd = pl.reciprocal(dot_diag, approx=True)                # EUP, hoisted

    fea_ref[...] = phi * (x0phi * inv_dd)                        # (S, D)

    # TODO(synk): compute_sigma_s is not defined in the reference source;
    # implemented here as the per-sample row-sum of phi (one scalar / sample).
    sig_ref[...] = jnp.sum(phi, axis=1, keepdims=True)           # (S, 1)
    k_ref[...] = (x0phi * x0phi) * inv_dd                        # (S, 1)


def _decode_kernel(beta, t_ref, sig_ref, k_ref, w_ref, xt_ref, sc_ref):
    """One T-tile of the decoder + soft constraint (lane-dense outputs).

    t:   (TILE_T, 1)
    sig: (1, S)
    k:   (1, S)
    w:   (S, S*D)  block-diagonal expansion of fea_vec
    out xt: (TILE_T, S*D)
    out sc: (TILE_T, S)
    """
    t = t_ref[...]                                       # (TILE_T, 1)
    ed = jnp.exp(-beta * (t * sig_ref[...]))             # (TILE_T, S)  EUP: T*S

    # x_t[t, s*D+d] = ed[t, s] * fea_vec[s, d]  — lane-repeat via tiny MXU matmul
    xt_ref[...] = jnp.dot(ed, w_ref[...],
                          preferred_element_type=jnp.float32,
                          precision=jax.lax.Precision.HIGHEST)

    # soft constraint, lane-dense (no trailing 1-dim)
    sc_ref[...] = (ed * ed) * k_ref[...]


def probabilistic_network_diffusion_forward(time, eps, x_0, nu, Psi, beta):
    """JAX/Pallas equivalent of Probabilistic_NetworkDiffusion.forward.

    Returns (x_t_pred, x0xt_pred, phi) exactly as the PyTorch module does
    (soft_constr == 1).  The torch.randn draw inside `phi()` is replaced by the
    deterministic `eps` argument.
    """
    D = int(nu.shape[0])
    S = int(eps.shape[0])
    T = int(time.shape[0])
    inv_norm = 1.0 / (float(D) ** 0.5)

    # Glue (cheap elementwise / reshapes) stays in plain JAX.
    chol = jnp.tril(Psi, k=-1) + jnp.eye(D, dtype=Psi.dtype)
    x0_row = x_0.reshape(1, D).astype(jnp.float32)
    nu_row = nu.reshape(1, D).astype(jnp.float32)

    vmem = pl.BlockSpec(memory_space=pltpu.MemorySpace.VMEM)

    # ---- Kernel A: phi + per-sample statistics (single tiny block) --------
    phi, fea_vec, sig_col, k_col = pl.pallas_call(
        functools.partial(_phi_kernel, inv_norm),
        out_shape=(
            jax.ShapeDtypeStruct((S, D), jnp.float32),
            jax.ShapeDtypeStruct((S, D), jnp.float32),
            jax.ShapeDtypeStruct((S, 1), jnp.float32),
            jax.ShapeDtypeStruct((S, 1), jnp.float32),
        ),
        in_specs=[vmem] * 4,
        out_specs=(vmem, vmem, vmem, vmem),
    )(eps.astype(jnp.float32), chol.astype(jnp.float32), nu_row, x0_row)

    # Tiny layout plumbing in plain XLA (a few hundred floats).
    sig_row = sig_col.reshape(1, S)
    k_row = k_col.reshape(1, S)
    fea_flat = fea_vec.reshape(1, S * D)
    # Block-diagonal expansion: W[s, s*D + d] = fea_vec[s, d]
    expand = (jnp.arange(S * D, dtype=jnp.int32)[None, :] // D
              == jnp.arange(S, dtype=jnp.int32)[:, None]).astype(jnp.float32)
    W = expand * fea_flat                                   # (S, S*D)

    # ---- Kernel B: T-tiled decode with lane-dense stores -------------------
    TILE_T = min(256, ((T + 7) // 8) * 8)
    n_t = -(-T // TILE_T)
    T_pad = n_t * TILE_T
    time_col = time.reshape(T, 1).astype(jnp.float32)
    if T_pad != T:
        time_col = jnp.pad(time_col, ((0, T_pad - T), (0, 0)))

    xt_flat, sc = pl.pallas_call(
        functools.partial(_decode_kernel, float(beta)),
        out_shape=(
            jax.ShapeDtypeStruct((T_pad, S * D), jnp.float32),
            jax.ShapeDtypeStruct((T_pad, S), jnp.float32),
        ),
        grid=(n_t,),
        in_specs=[
            pl.BlockSpec((TILE_T, 1), lambda i: (i, 0)),
            pl.BlockSpec((1, S), lambda i: (0, 0)),
            pl.BlockSpec((1, S), lambda i: (0, 0)),
            pl.BlockSpec((S, S * D), lambda i: (0, 0)),
        ],
        out_specs=(
            pl.BlockSpec((TILE_T, S * D), lambda i: (i, 0)),
            pl.BlockSpec((TILE_T, S), lambda i: (i, 0)),
        ),
        compiler_params=pltpu.CompilerParams(
            dimension_semantics=("parallel",),
            vmem_limit_bytes=32 * 1024 * 1024,
        ),
    )(time_col, sig_row, k_row, W)

    if T_pad != T:
        xt_flat = xt_flat[:T]
        sc = sc[:T]
    x_t_pred = xt_flat.reshape(T, S, D)     # contiguous reshape (free)
    x0xt_pred = sc                          # already (T, S), no squeeze copy
    return x_t_pred, x0xt_pred, phi


def _reference_forward(time, eps, x_0, nu, Psi, beta):
    """Pure-JAX mirror of the PyTorch forward (for verification)."""
    D = nu.shape[0]
    chol = jnp.tril(Psi, k=-1) + jnp.eye(D, dtype=Psi.dtype)
    phi = jnp.exp((jnp.dot(eps, chol,
                           precision=jax.lax.Precision.HIGHEST) + nu)
                  / (D ** 0.5))
    x0phi = phi @ x_0.reshape(-1, 1)
    gram = phi @ phi.T
    dot_diag = jnp.diag(gram)
    weights = x0phi / dot_diag.reshape(-1, 1)
    fea_vec = phi * weights
    sigma = jnp.sum(phi, axis=1)                           # compute_sigma_s
    exp_decay = jnp.exp(-beta * jnp.outer(time, sigma))
    x_t = exp_decay[:, :, None] * fea_vec[None, :, :]
    mat = jnp.einsum('tsd,kd->tsk', x_t, phi)
    diag = jnp.diagonal(mat, axis1=1, axis2=2)
    x0xt = diag ** 2 / dot_diag
    return x_t.astype(jnp.float32), x0xt, phi


if __name__ == "__main__":
    key = jax.random.PRNGKey(0)
    k1, k2, k3, k4 = jax.random.split(key, 4)

    D = 16          # dimension (x_0 is (D, 1))
    S = 8           # sample_size
    T = 8           # number of time points
    beta = 0.5

    x_0 = jax.random.normal(k1, (D, 1), dtype=jnp.float32)
    nu = jax.random.normal(k2, (D,), dtype=jnp.float32)        # Parameter nu
    Psi = jax.random.normal(k3, (D, D), dtype=jnp.float32)     # Parameter Psi
    eps = jax.random.normal(k4, (S, D), dtype=jnp.float32)     # randn in phi()
    time = jnp.linspace(0.1, 1.0, T, dtype=jnp.float32)

    x_t_pred, x0xt_pred, phi = probabilistic_network_diffusion_forward(
        time, eps, x_0, nu, Psi, beta)
    jax.block_until_ready((x_t_pred, x0xt_pred, phi))

    assert x_t_pred.shape == (T, S, D)
    assert x0xt_pred.shape == (T, S)
    assert phi.shape == (S, D)

    # Verify against the pure-JAX reference.
    xr, sr, pr = _reference_forward(time, eps, x_0, nu, Psi, beta)
    assert jnp.allclose(x_t_pred, xr, rtol=2e-3, atol=2e-3)
    assert jnp.allclose(x0xt_pred, sr, rtol=2e-3, atol=2e-3)
    assert jnp.allclose(phi, pr, rtol=2e-3, atol=2e-3)

    print("KERNEL_OK")
</pallas_src>

<mosaic_0001>
module attributes {stable_mosaic.version = 11 : i64} {
  func.func @_phi_kernel(%arg0: memref<8x16xf32, #tpu.memory_space<vmem>>, %arg1: memref<16x16xf32, #tpu.memory_space<vmem>>, %arg2: memref<1x16xf32, #tpu.memory_space<vmem>>, %arg3: memref<1x16xf32, #tpu.memory_space<vmem>>, %arg4: memref<8x16xf32, #tpu.memory_space<vmem>>, %arg5: memref<8x16xf32, #tpu.memory_space<vmem>>, %arg6: memref<8x1xf32, #tpu.memory_space<vmem>>, %arg7: memref<8x1xf32, #tpu.memory_space<vmem>>) attributes {dimension_semantics = [], scalar_prefetch = 0 : i64, scratch_operands = 0 : i64, tpu.core_type = #tpu.core_type<tc>} {
    %c0 = arith.constant 0 : index
    %c0_0 = arith.constant 0 : index
    %0 = vector.load %arg0[%c0, %c0_0] : memref<8x16xf32, #tpu.memory_space<vmem>>, vector<8x16xf32>
    %c0_1 = arith.constant 0 : index
    %c0_2 = arith.constant 0 : index
    %1 = vector.load %arg1[%c0_1, %c0_2] : memref<16x16xf32, #tpu.memory_space<vmem>>, vector<16x16xf32>
    %cst = arith.constant dense<0.000000e+00> : vector<8x16xf32>
    %2 = tpu.matmul %0, %1, %cst {dimension_numbers = #tpu.dot_dimension_numbers<[1], [0], [0], [1], [0, 0, 1, 1], [], []>, precision = #tpu.contract_precision<fp32>} : vector<8x16xf32>, vector<16x16xf32>, vector<8x16xf32> -> vector<8x16xf32>
    %c0_3 = arith.constant 0 : index
    %c0_4 = arith.constant 0 : index
    %3 = vector.load %arg2[%c0_3, %c0_4] : memref<1x16xf32, #tpu.memory_space<vmem>>, vector<1x16xf32>
    %4 = vector.broadcast %3 : vector<1x16xf32> to vector<8x16xf32>
    %5 = arith.addf %2, %4 : vector<8x16xf32>
    %cst_5 = arith.constant 2.500000e-01 : f32
    %6 = vector.broadcast %cst_5 : f32 to vector<8x16xf32>
    %7 = arith.mulf %5, %6 : vector<8x16xf32>
    %8 = math.exp %7 : vector<8x16xf32>
    %c0_6 = arith.constant 0 : index
    %c0_7 = arith.constant 0 : index
    %9 = vector.load %arg4[%c0_6, %c0_7] : memref<8x16xf32, #tpu.memory_space<vmem>>, vector<8x16xf32>
    tpu.vector_store %arg4[%c0_6, %c0_7], %8 {strides = array<i32>} : memref<8x16xf32, #tpu.memory_space<vmem>>, vector<8x16xf32>,
    %c0_8 = arith.constant 0 : index
    %c0_9 = arith.constant 0 : index
    %10 = vector.load %arg3[%c0_8, %c0_9] : memref<1x16xf32, #tpu.memory_space<vmem>>, vector<1x16xf32>
    %11 = vector.broadcast %10 : vector<1x16xf32> to vector<8x16xf32>
    %12 = arith.mulf %8, %11 : vector<8x16xf32>
    %cst_10 = arith.constant dense<0.000000e+00> : vector<8xf32>
    %13 = vector.multi_reduction <add>, %12, %cst_10 [1] : vector<8x16xf32> to vector<8xf32>
    %14 = vector.shape_cast %13 : vector<8xf32> to vector<8x1xf32>
    %15 = arith.mulf %8, %8 : vector<8x16xf32>
    %cst_11 = arith.constant dense<0.000000e+00> : vector<8xf32>
    %16 = vector.multi_reduction <add>, %15, %cst_11 [1] : vector<8x16xf32> to vector<8xf32>
    %17 = vector.shape_cast %16 : vector<8xf32> to vector<8x1xf32>
    %18 = tpu.reciprocal %17 {approx = true} : vector<8x1xf32> -> vector<8x1xf32>
    %19 = arith.mulf %14, %18 : vector<8x1xf32>
    %20 = vector.broadcast %19 : vector<8x1xf32> to vector<8x16xf32>
    %21 = arith.mulf %8, %20 : vector<8x16xf32>
    %c0_12 = arith.constant 0 : index
    %c0_13 = arith.constant 0 : index
    %22 = vector.load %arg5[%c0_12, %c0_13] : memref<8x16xf32, #tpu.memory_space<vmem>>, vector<8x16xf32>
    tpu.vector_store %arg5[%c0_12, %c0_13], %21 {strides = array<i32>} : memref<8x16xf32, #tpu.memory_space<vmem>>, vector<8x16xf32>,
    %cst_14 = arith.constant dense<0.000000e+00> : vector<8xf32>
    %23 = vector.multi_reduction <add>, %8, %cst_14 [1] : vector<8x16xf32> to vector<8xf32>
    %24 = vector.shape_cast %23 : vector<8xf32> to vector<8x1xf32>
    %c0_15 = arith.constant 0 : index
    %c0_16 = arith.constant 0 : index
    %25 = vector.load %arg6[%c0_15, %c0_16] : memref<8x1xf32, #tpu.memory_space<vmem>>, vector<8x1xf32>
    tpu.vector_store %arg6[%c0_15, %c0_16], %24 {strides = array<i32>} : memref<8x1xf32, #tpu.memory_space<vmem>>, vector<8x1xf32>,
    %26 = arith.mulf %14, %14 : vector<8x1xf32>
    %27 = arith.mulf %26, %18 : vector<8x1xf32>
    %c0_17 = arith.constant 0 : index
    %c0_18 = arith.constant 0 : index
    %28 = vector.load %arg7[%c0_17, %c0_18] : memref<8x1xf32, #tpu.memory_space<vmem>>, vector<8x1xf32>
    tpu.vector_store %arg7[%c0_17, %c0_18], %27 {strides = array<i32>} : memref<8x1xf32, #tpu.memory_space<vmem>>, vector<8x1xf32>,
    return
  }
}

</mosaic_0001>

<bundles_post_ra>
// kernel: tpu_custom_call.1
= control target key start
LH: loop header
LB: loop body
LE: loop exit
PB: predicated region body
PF: predicated region fallthrough
CT: control target
= control target key end

     0   :  { %13 = vsyncpa [#allocation3], 0  ;;  %s918_s0 = inlined_call_operand.hbm [shape: f32[8,16], index: 0, kind: input, shape index: {}]   ;;  %s919_s1 = inlined_call_operand.hbm [shape: f32[16,16], index: 1, kind: input, shape index: {}]   ;;  %s920_s2 = inlined_call_operand.vmem [shape: f32[1,16], index: 2, kind: input, shape index: {}]   ;;  %s921_s3 = inlined_call_operand.vmem [shape: f32[1,16], index: 3, kind: input, shape index: {}]   ;;  %s922_s4 = inlined_call_operand.hbm [shape: f32[8,16], index: 4, kind: output, shape index: {0}]   ;;  %s923_s5 = inlined_call_operand.hbm [shape: f32[8,16], index: 5, kind: output, shape index: {1}]   ;;  %s924_s6 = inlined_call_operand.vmem [shape: f32[8,1], index: 6, kind: output, shape index: {2}]   ;;  %s925_s7 = inlined_call_operand.vmem [shape: f32[8,1], index: 7, kind: output, shape index: {3}]  }
   0x1   :  { %14 = vsyncpa [#allocation6], 0 }
   0x2   :  { %15 = vsyncpa [#allocation4], 0 }
   0x3   :  { %16 = vsyncpa [#allocation9], 0  ;;  %s790_s24 = smov [#allocation2]   ;;  %s791_s26 = smov [#allocation5]  }
   0x4   :  { %s23_s25 = sshll.u32 %s790_s24, 4  ;;  %s32_s27 = sshll.u32 %s791_s26, 4  ;;  %s24_s25 = int_to_ptr.vmem [resolvable:$true] %s23_s25  ;;  %s839_s27 = int_to_ptr.vmem [resolvable:$true] %s32_s27 }
   0x5   :  { %s694_s30 = scalar_lea.hbm %s918_s0, 128 }
   0x6   :  { %p695_p0 = scmp.ne.s32.totalorder %s918_s0, %s694_s30  ;;  %p698_p1 = scmp.lt.u32.totalorder %s694_s30, %s918_s0 }
   0x8   :  { %p700_p2 = pnand %p698_p1, %p695_p0 }
   0xa   :  { %703 = shalt.err (!%p700_p2)
}
   0xb   :  { %s704_s12 = scalar_lea.vmem %s24_s25, 128  ;;  %p709_p4 = scmp.lt.s32.totalorder %s24_s25, %s24_s25 }
   0xc   :  { %p705_p3 = scmp.ne.s32.totalorder %s24_s25, %s704_s12  ;;  %p710_p5 = scmp.lt.s32.totalorder %s704_s12, %s704_s12 }
   0xe   :  { %p711_p6 = por %p710_p5, %p709_p4 }
  0x10   :  { %p712_p7 = pnand %p711_p6, %p705_p3 }
  0x12   :  { %715 = shalt.err (!%p712_p7)
}
  0x13   :  { %26 = dma.hbm_to_vmem [thread:$0]  %s918_s0, 128, %s24_s25, [#allocation3]  }
  0x14   :  { %s716_s17 = scalar_lea.hbm %s919_s1, 256 }
  0x15   :  { %p717_p8 = scmp.ne.s32.totalorder %s919_s1, %s716_s17  ;;  %p720_p9 = scmp.lt.u32.totalorder %s716_s17, %s919_s1 }
  0x17   :  { %p722_p10 = pnand %p720_p9, %p717_p8 }
  0x19   :  { %725 = shalt.err (!%p722_p10)
}
  0x1a   :  { %s726_s22 = scalar_lea.vmem %s839_s27, 256  ;;  %p731_p12 = scmp.lt.s32.totalorder %s839_s27, %s839_s27 }
  0x1b   :  { %p727_p11 = scmp.ne.s32.totalorder %s839_s27, %s726_s22  ;;  %p732_p13 = scmp.lt.s32.totalorder %s726_s22, %s726_s22 }
  0x1d   :  { %p733_p0 = por %p732_p13, %p731_p12 }
  0x1f   :  { %p734_p1 = pnand %p733_p0, %p727_p11 }
  0x21   :  { %737 = shalt.err (!%p734_p1)
}
  0x22   :  { %s792_s0 = smov 128   ;;  %s793_s23 = smov 8  }
  0x23   :  { %38 = dma.hbm_to_vmem [thread:$0]  %s919_s1, 256, %s839_s27, [#allocation6], %s792_s0, %s792_s0, %s793_s23  }
  0x24   :  { %782 = dma.done.wait [#allocation3], 128  }
  0x25   :  { %783 = vsyncadd [#allocation3], 4294967168 }
  0x26   :  { %784 = dma.done.wait [#allocation6], 256  }
  0x27   :  { %785 = vsyncadd [#allocation6], 4294967040  ;;  %v794_v0 = vmov 0.0|0.0   ;;  %vm795_vm0 = vmmov 0   ;;  %v796_v1 = vmov 0.0   ;;  %vm59_vm1 = vcmask 130048  }
  0x28   :  { %662 = vmatprep.subr.bf16.mxu0 %v794_v0  ;;  %636 = vmatprep.mubr.msk.f32.mxu0 %vm795_vm0, %v796_v1  ;;  %v50_v2 = vld [vmem:[#allocation5] sm:$0xff]  ;;  %v51_v3 = vld [vmem:[#allocation5 + $0x8] sm:$0xff]  ;;  %v49_v4 = vld [vmem:[#allocation2] sm:$0xff] }
  0x29   :  { %653 = vmatprep.subr.bf16.mxu1 %v794_v0  ;;  %615 = vmatprep.mubr.msk.f32.mxu1 %vm795_vm0, %v796_v1  ;;  %v64_v5 = vand.u32 4294901760, %v50_v2  ;;  %v67_v6 = vand.u32 4294901760, %v51_v3  ;;  %v61_v7 = vsel %vm59_vm1, %v49_v4, 0  ;;  %v591_v27 = vld [vmem:[%s920_s2] ss:$0 sm:$0xff]  ;;  %s797_s2 = smov [#allocation7]  }
  0x2a   :  { %v130_v8 = vand.u32 4294901760, %v61_v7  ;;  %v592_v35 = vld [vmem:[%s921_s3] ss:$0 sm:$0xff]  ;;  %s559_s29 = sshll.u32 %s797_s2, 4  ;;  %s560_s29 = int_to_ptr.vmem [resolvable:$true] %s559_s29 }
  0x2b   :  { %v654_v9 = vpack.c.bf16 %v67_v6, %v64_v5  ;;  %v142_v10 = vsub.f32 %v50_v2, %v64_v5  ;;  %v149_v11 = vsub.f32 %v51_v3, %v67_v6  ;;  %s738_s30 = scalar_lea.vmem %s560_s29, 128  ;;  %p743_p3 = scmp.lt.s32.totalorder %s560_s29, %s560_s29 }
  0x2c   :  { %v131_v12 = vsub.f32 %v61_v7, %v130_v8  ;;  %p739_p2 = scmp.ne.s32.totalorder %s560_s29, %s738_s30  ;;  %p744_p4 = scmp.lt.s32.totalorder %s738_s30, %s738_s30 }
  0x2d   :  { %664 = vmatpush3.bf16.msra.mxu0 %v654_v9  ;;  %655 = vmatpush3.bf16.msra.mxu1 %v654_v9  ;;  %v143_v13 = vand.u32 4294901760, %v142_v10  ;;  %v150_v14 = vand.u32 4294901760, %v149_v11  ;;  %v660_v24 = vpack.c.bf16 %v149_v11, %v142_v10 }
  0x2e   :  { %v132_v15 = vand.u32 4294901760, %v131_v12  ;;  %656 = vmatprep.subr.bf16.mxu1 %v794_v0  ;;  %665 = vmatprep.subr.bf16.mxu0 %v794_v0  ;;  %p745_p5 = por %p744_p4, %p743_p3 }
  0x2f   :  { %v144_v16 = vsub.f32 %v142_v10, %v143_v13  ;;  %v151_v17 = vsub.f32 %v149_v11, %v150_v14  ;;  %v666_v18 = vpack.c.bf16 %v150_v14, %v143_v13 }
  0x30   :  { %637 = vmatmul.mubr.f32.vlgmr.msra.gmra.mrb[0].mxu0 %v132_v15  ;;  %v133_v19 = vsub.f32 %v131_v12, %v132_v15  ;;  %p746_p6 = pnand %p745_p5, %p739_p2 }
  0x31   :  { %v145_v20 = vand.u32 4294901760, %v144_v16  ;;  %v152_v21 = vand.u32 4294901760, %v151_v17  ;;  %667 = vmatpush3.bf16.msra.mxu0 %v666_v18  ;;  %643 = vmatprep.mubr.msk.f32.mxu0 %vm795_vm0, %v796_v1 }
  0x32   :  { %v134_v22 = vand.u32 4294901760, %v133_v19  ;;  %668 = vmatprep.subr.bf16.mxu0 %v794_v0 }
  0x33   :  { %v657_v23 = vpack.c.bf16 %v152_v21, %v145_v20 }
  0x34   :  { %616 = vmatmul.mubr.f32.vlgmr.msra.gmra.mrb[0].mxu1 %v134_v22 }
  0x35   :  { %658 = vmatpush3.bf16.msra.mxu1 %v657_v23  ;;  %622 = vmatprep.mubr.msk.f32.mxu1 %vm795_vm0, %v796_v1 }
  0x36   :  { %659 = vmatprep.subr.bf16.mxu1 %v794_v0 }
  0x38   :  { %644 = vmatmul.mubr.f32.vlgmr.msra.gmra.mrb[0].mxu0 %v130_v8 }
  0x39   :  { %670 = vmatpush3.bf16.msra.mxu0 %v654_v9  ;;  %650 = vmatprep.mubr.msk.f32.mxu0 %vm795_vm0, %v796_v1 }
  0x3c   :  { %623 = vmatmul.mubr.f32.vlgmr.msra.gmra.mrb[0].mxu1 %v130_v8 }
  0x3d   :  { %661 = vmatpush3.bf16.msra.mxu1 %v660_v24  ;;  %629 = vmatprep.mubr.msk.f32.mxu1 %vm795_vm0, %v796_v1 }
  0x40   :  { %651 = vmatmul.mubr.f32.vlgmr.msra.gmra.mrb[0].mxu0 %v130_v8 }
  0x44   :  { %630 = vmatmul.mubr.f32.vlgmr.msra.gmra.mrb[0].mxu1 %v131_v12 }
 0x113   :  { %v518_v25 = vpop.f32.mrb[0].mxu0 }
 0x114   :  { %v652_v26 = vpop.f32.mrb[1].mxu0 }
 0x117   :  { %v293_v28 = vpop.f32.mrb[0].mxu1 }
 0x118   :  { %v671_v29 = vadd.f32 %v591_v27, %v293_v28  ;;  %v631_v30 = vpop.f32.mrb[1].mxu1 }
 0x11a   :  { %v672_v31 = vadd.f32 %v671_v29, %v518_v25 }
 0x11c   :  { %v522_v32 = vmul.f32 0.25, %v672_v31 }
 0x11e   :  { %v523_v33 = vmul.f32 1.442695, %v522_v32 }
 0x120   :  { %690 = vpow2.f32 %v523_v33 }
 0x12a   :  { %v691_v34 = vpop.eup %690 }
 0x12b   :  { %525 = vst.msk [vmem:[#allocation7] sm:$0xff] %vm59_vm1, %v691_v34  ;;  %v545_v36 = vsel %vm59_vm1, %v691_v34, 0.0  ;;  %v537_v37 = vmul.f32 %v691_v34, %v691_v34  ;;  %v533_v39 = vmul.f32 %v691_v34, %v592_v35 }
 0x12c   :  { %546 = vadd.xlane.f32.xlu1 %v545_v36 }
 0x12d   :  { %v538_v38 = vsel %vm59_vm1, %v537_v37, 0.0  ;;  %v534_v40 = vsel %vm59_vm1, %v533_v39, 0.0 }
 0x12e   :  { %539 = vadd.xlane.f32.xlu0 %v538_v38 }
 0x132   :  { %535 = vadd.xlane.f32.xlu0 %v534_v40 }
 0x133   :  { %749 = shalt.err (!%p746_p6)
}
 0x134   :  { %s750_s9 = scalar_lea.hbm %s922_s4, 128 }
 0x135   :  { %p751_p7 = scmp.ne.s32.totalorder %s922_s4, %s750_s9  ;;  %p754_p8 = scmp.lt.u32.totalorder %s750_s9, %s922_s4 }
 0x137   :  { %p756_p9 = pnand %p754_p8, %p751_p7 }
 0x139   :  { %759 = shalt.err (!%p756_p9)
}
 0x13a   :  { %562 = dma.vmem_to_hbm [thread:$0]  %s560_s29, 128, %s922_s4, [#allocation4]   ;;  %vm548_vm2 = vcmask 7168  }
 0x13b   :  { %s798_s18 = smov [#allocation8]  }
 0x13c   :  { %s569_s19 = sshll.u32 %s798_s18, 4  ;;  %s570_s19 = int_to_ptr.vmem [resolvable:$true] %s569_s19 }
 0x13d   :  { %s760_s4 = scalar_lea.vmem %s570_s19, 128  ;;  %p765_p11 = scmp.lt.s32.totalorder %s570_s19, %s570_s19 }
 0x13e   :  { %p761_p10 = scmp.ne.s32.totalorder %s570_s19, %s760_s4  ;;  %p766_p12 = scmp.lt.s32.totalorder %s760_s4, %s760_s4 }
 0x140   :  { %p767_p13 = por %p766_p12, %p765_p11 }
 0x142   :  { %p768_p0 = pnand %p767_p13, %p761_p10 }
 0x1b9   :  { %v547_v41 = vpop.xlane.xlu1 %546 }
 0x1ba   :  { %549 = vst.msk [vmem:[%s924_s6] sm:$0xff] %vm548_vm2, %v547_v41 }
 0x1bb   :  { %v540_v42 = vpop.xlane.xlu0 %539 }
 0x1bc   :  { %692 = vrcp.f32 %v540_v42 }
 0x1bf   :  { %v536_v43 = vpop.xlane.xlu0 %535 }
 0x1c0   :  { %v550_v44 = vmul.f32 %v536_v43, %v536_v43 }
 0x1c6   :  { %v693_v45 = vpop.eup %692 }
 0x1c7   :  { %v542_v46 = vmul.f32 %v693_v45, %v536_v43  ;;  %v551_v47 = vmul.f32 %v693_v45, %v550_v44 }
 0x1c9   :  { %v543_v48 = vmul.f32 %v691_v34, %v542_v46  ;;  %552 = vst.msk [vmem:[%s925_s7] sm:$0xff] %vm548_vm2, %v551_v47 }
 0x1cb   :  { %544 = vst.msk [vmem:[#allocation8] sm:$0xff] %vm59_vm1, %v543_v48 }
 0x1cc   :  { %771 = shalt.err (!%p768_p0)
}
 0x1cd   :  { %s772_s0 = scalar_lea.hbm %s923_s5, 128 }
 0x1ce   :  { %p773_p1 = scmp.ne.s32.totalorder %s923_s5, %s772_s0  ;;  %p776_p2 = scmp.lt.u32.totalorder %s772_s0, %s923_s5 }
 0x1d0   :  { %p778_p3 = pnand %p776_p2, %p773_p1 }
 0x1d2   :  { %781 = shalt.err (!%p778_p3)
}
 0x1d3   :  { %572 = dma.vmem_to_hbm [thread:$0]  %s570_s19, 128, %s923_s5, [#allocation9]  }
 0x1d4   :  { %786 = dma.done.wait [#allocation4], 128  }
 0x1d5   :  { %787 = vsyncadd [#allocation4], 4294967168 }
 0x1d6   :  { %788 = dma.done.wait [#allocation9], 128  }
 0x1d7   :  { %789 = vsyncadd [#allocation9], 4294967168 }
 0x1d8   :  { %587 = vsyncpa [#allocation3], 1 }
 0x1d9   :  { %588 = vsyncpa [#allocation6], 1 }
 0x1da   :  { %589 = vsyncpa [#allocation4], 1 }
 0x1db   :  { %590 = vsyncpa [#allocation9], 1 }

</bundles_post_ra>
